<compile_context>
chip_gen: v7x
topology: tpu7x:2x2x1
jax: 0.10.0
libtpu: 0.0.40
codegen_flags: <defaults>
</compile_context>

<pallas_src>
import functools
import math

import jax
import jax.numpy as jnp
from jax.experimental import pallas as pl
from jax.experimental.pallas import tpu as pltpu

_INV_SQRT2 = 0.7071067811865476
_SQRT_2_OVER_PI = 0.7978845608028654
_LN_EPS = 1e-5


def _round_up(x, m):
    return (x + m - 1) // m * m


def _tpu_vmem_capacity_bytes():
    try:
        return int(pltpu.get_tpu_info().vmem_capacity_bytes)
    except Exception:
        return 64 * 1024 * 1024       # conservative: v7x per-TensorCore VMEM


# -----------------------------------------------------------------------------
# Kernel: one (head, batch-tile) grid step of the fused adapter + classifier.
#   refs:  x (TM, Hp) bf16, w1 (Hp, Hp) bf16, lnvec (3, Hp) f32 [b1;gamma;beta],
#          wc (Hp, Cp) bf16, bc (1, Cp) f32, out (TM, Cp) f32
# -----------------------------------------------------------------------------
def _adapter_kernel(x_ref, w1_ref, lnvec_ref, wc_ref, bc_ref, out_ref, *,
                    inv_h, h, hp, approximate_gelu):
    x16 = x_ref[...]                                    # bf16 tile
    x = x16.astype(jnp.float32)

    lnv = lnvec_ref[...]                                # (3, Hp) f32
    b1 = lnv[0:1, :]
    gamma = lnv[1:2, :]
    beta = lnv[2:3, :]

    # Linear(hidden -> hidden): bf16 MXU path, f32 accumulation.
    y = jnp.dot(x16, w1_ref[...], preferred_element_type=jnp.float32) + b1

    # Two-pass LayerNorm over the TRUE hidden dim H (PyTorch-exact).
    # Padded columns of y are exactly 0 -> mean sum over Hp == sum over H.
    mean = jnp.sum(y, axis=-1, keepdims=True) * inv_h
    centered = y - mean
    if hp != h:
        # Mask padded lanes so they contribute neither to the variance nor to
        # the normalized output (gamma/beta are zero there anyway).
        col = jax.lax.broadcasted_iota(jnp.int32, (1, hp), 1)
        centered = jnp.where(col < h, centered, 0.0)
    var = jnp.sum(centered * centered, axis=-1, keepdims=True) * inv_h
    ln = centered * jax.lax.rsqrt(var + _LN_EPS) * gamma + beta

    if approximate_gelu:
        # tanh approximation routes through the EUP slot (co-issues w/ VALU).
        inner = jnp.float32(_SQRT_2_OVER_PI) * (ln + 0.044715 * ln * ln * ln)
        gelu = 0.5 * ln * (1.0 + jnp.tanh(inner))
    else:
        # Exact GELU (PyTorch nn.GELU() default): 0.5*x*(1 + erf(x/sqrt(2)))
        gelu = 0.5 * ln * (1.0 + jax.lax.erf(ln * jnp.float32(_INV_SQRT2)))

    # Residual (Dropout identity at inference) + classifier Linear.
    adapted = x + gelu                                  # padded cols stay 0
    logits = jnp.dot(adapted.astype(jnp.bfloat16), wc_ref[...],
                     preferred_element_type=jnp.float32)
    out_ref[...] = (logits + bc_ref[...]).astype(out_ref.dtype)


# -----------------------------------------------------------------------------
# One-time weight preparation (hoisted out of the forward path).
# -----------------------------------------------------------------------------
def pack_task_adapter_heads(heads):
    """Pad to lane-dense (multiple of 128) dims, stack across heads and cast
    matmul operands to bf16 ONCE.  Cache the returned dict and reuse it for
    every forward call.

    heads: list of dicts with w1 (H,H), b1 (H,), gamma (H,), beta (H,),
           wc (H,C_i), bc (C_i,)   (weights stored as (in, out))."""
    f32, bf16 = jnp.float32, jnp.bfloat16
    H = int(heads[0]["w1"].shape[0])
    Cs = [int(h["wc"].shape[1]) for h in heads]
    Hp = _round_up(H, 128)
    Cp = _round_up(max(Cs), 128)

    def pad2(a, r, c):
        a = jnp.asarray(a, f32)
        return jnp.zeros((r, c), f32).at[:a.shape[0], :a.shape[1]].set(a)

    w1s = jnp.stack([pad2(h["w1"], Hp, Hp) for h in heads]).astype(bf16)
    wcs = jnp.stack([pad2(h["wc"], Hp, Cp) for h in heads]).astype(bf16)
    # b1 / gamma / beta packed into one (NH, 3, Hp) f32 tensor (one DMA/step).
    lnvec = jnp.stack([
        jnp.stack([pad2(h["b1"].reshape(1, -1), 1, Hp)[0],
                   pad2(h["gamma"].reshape(1, -1), 1, Hp)[0],
                   pad2(h["beta"].reshape(1, -1), 1, Hp)[0]])
        for h in heads])
    bcs = jnp.stack([pad2(h["bc"].reshape(1, -1), 1, Cp) for h in heads])

    return dict(w1=w1s, lnvec=lnvec, wc=wcs, bc=bcs,
                hidden_dim=H, hp=Hp, cp=Cp, num_classes=tuple(Cs))


# -----------------------------------------------------------------------------
# Wrapper: fused forward for one or more TaskSpecificAdapter heads sharing x.
# -----------------------------------------------------------------------------
def fused_task_adapters_forward(x, packed_or_heads, *, approximate_gelu=False):
    """x: (B, H) float features.
    packed_or_heads: result of pack_task_adapter_heads() (preferred), or a
    raw list of head param dicts (packed on the fly).
    Returns a list of (B, C_i) float32 logits, one per head."""
    packed = (packed_or_heads if isinstance(packed_or_heads, dict)
              else pack_task_adapter_heads(packed_or_heads))
    H, Hp, Cp = packed["hidden_dim"], packed["hp"], packed["cp"]
    Cs = packed["num_classes"]
    NH = int(packed["w1"].shape[0])
    B = int(x.shape[0])
    assert int(x.shape[1]) == H

    f32, bf16 = jnp.float32, jnp.bfloat16

    vmem_cap = _tpu_vmem_capacity_bytes()
    # Generation-aware batch tile: 512 rows on 128-MiB-VMEM parts (v5e/v6e),
    # 256 on v7x (64 MiB per TensorCore).
    tm_cap = 512 if vmem_cap >= (100 << 20) else 256
    TM = min(tm_cap, _round_up(B, 16))
    Bp = _round_up(B, TM)

    # Only the activations are padded per call; weights were packed at init.
    x_p = jnp.zeros((Bp, Hp), f32).at[:B, :H].set(x.astype(f32)).astype(bf16)

    # Weight-stationary grid: heads outermost (one head per TensorCore under
    # v7x megacore sharding), batch tiles innermost -> weight block indices
    # are constant across consecutive steps, so each head's weights are DMA'd
    # exactly once and stay VMEM-resident while x / out stream.
    grid = (NH, Bp // TM)

    # VMEM budget (upper bound: assume double-buffered weights so the
    # fallback path also fits), clamped to 85% of this chip's capacity.
    block_bytes = (2 * TM * Hp * 2 + 2 * TM * Cp * 4       # x / out blocks
                   + 2 * Hp * Hp * 2 + 2 * Hp * Cp * 2     # w1 / wc
                   + 2 * 3 * Hp * 4 + 2 * Cp * 4)          # lnvec / bc
    interm_bytes = 8 * TM * Hp * 4 + 2 * TM * Cp * 4       # f32 temporaries
    vmem_limit = int(min(max(block_bytes + interm_bytes + (4 << 20), 16 << 20),
                         int(0.85 * vmem_cap)))

    cost = pl.CostEstimate(
        flops=2 * NH * Bp * Hp * (Hp + Cp),
        transcendentals=NH * Bp * Hp,
        bytes_accessed=(NH * Bp * Hp * 2 + NH * (Hp * Hp + Hp * Cp) * 2
                        + NH * (3 * Hp + Cp) * 4 + NH * Bp * Cp * 4),
    )

    kernel = functools.partial(_adapter_kernel, inv_h=1.0 / H, h=H, hp=Hp,
                               approximate_gelu=approximate_gelu)

    def run(single_buffer_weights):
        # Weight block indices only change at head boundaries -> single
        # buffering halves weight VMEM (matters on v7x / large hidden dims).
        wkw = ({"pipeline_mode": pl.Buffered(1)} if single_buffer_weights
               else {})
        x_spec = pl.BlockSpec((TM, Hp), lambda hd, i: (i, 0))
        w1_spec = pl.BlockSpec((None, Hp, Hp), lambda hd, i: (hd, 0, 0), **wkw)
        ln_spec = pl.BlockSpec((None, 3, Hp), lambda hd, i: (hd, 0, 0), **wkw)
        wc_spec = pl.BlockSpec((None, Hp, Cp), lambda hd, i: (hd, 0, 0), **wkw)
        bc_spec = pl.BlockSpec((None, 1, Cp), lambda hd, i: (hd, 0, 0), **wkw)
        out_spec = pl.BlockSpec((None, TM, Cp), lambda hd, i: (hd, i, 0))
        return pl.pallas_call(
            kernel,
            out_shape=jax.ShapeDtypeStruct((NH, Bp, Cp), jnp.float32),
            grid=grid,
            in_specs=[x_spec, w1_spec, ln_spec, wc_spec, bc_spec],
            out_specs=out_spec,
            compiler_params=pltpu.CompilerParams(
                dimension_semantics=("parallel", "parallel"),
                vmem_limit_bytes=vmem_limit),
            cost_estimate=cost,
        )(x_p, packed["w1"], packed["lnvec"], packed["wc"], packed["bc"])

    try:
        out = run(True)
    except Exception:
        # Older JAX without per-spec pipeline_mode / Buffered(1): fall back to
        # default double-buffering (still weight-stationary).
        out = run(False)

    return [out[i, :B, :Cs[i]] for i in range(NH)]


def task_specific_adapter_forward(x, params):
    """Single-head TaskSpecificAdapter.forward (packs on the fly; for repeated
    calls pack once with pack_task_adapter_heads and reuse)."""
    return fused_task_adapters_forward(x, [params])[0]


# -----------------------------------------------------------------------------
# Deterministic parameter construction (mirrors nn.Linear / nn.LayerNorm init)
# -----------------------------------------------------------------------------
def make_task_adapter_params(key, hidden_dim, num_classes):
    def linear(k, fan_in, fan_out):
        kw, kb = jax.random.split(k)
        bound = 1.0 / math.sqrt(fan_in)
        w = jax.random.uniform(kw, (fan_in, fan_out), jnp.float32, -bound, bound)
        b = jax.random.uniform(kb, (fan_out,), jnp.float32, -bound, bound)
        return w, b

    k1, k2 = jax.random.split(key)
    w1, b1 = linear(k1, hidden_dim, hidden_dim)
    wc, bc = linear(k2, hidden_dim, num_classes)
    return dict(w1=w1, b1=b1,
                gamma=jnp.ones((hidden_dim,), jnp.float32),
                beta=jnp.zeros((hidden_dim,), jnp.float32),
                wc=wc, bc=bc)


# -----------------------------------------------------------------------------
# Pure-JAX reference (f32 math on bf16-rounded matmul operands, i.e. the same
# precision contract the kernel uses on the MXU).
# -----------------------------------------------------------------------------
def task_specific_adapter_reference(x, p):
    xb = x.astype(jnp.bfloat16).astype(jnp.float32)
    w1 = p["w1"].astype(jnp.bfloat16).astype(jnp.float32)
    wc = p["wc"].astype(jnp.bfloat16).astype(jnp.float32)
    y = xb @ w1 + p["b1"]
    mean = jnp.mean(y, axis=-1, keepdims=True)
    var = jnp.mean((y - mean) ** 2, axis=-1, keepdims=True)
    ln = (y - mean) * jax.lax.rsqrt(var + _LN_EPS) * p["gamma"] + p["beta"]
    g = 0.5 * ln * (1.0 + jax.lax.erf(ln * _INV_SQRT2))
    adapted = xb + g
    ab = adapted.astype(jnp.bfloat16).astype(jnp.float32)
    return ab @ wc + p["bc"]


if __name__ == "__main__":
    # Small shapes consistent with TaskSpecificAdapter.forward(x: (B, hidden)):
    B, HIDDEN = 2, 32
    SENT_CLASSES, CAT_CLASSES = 2, 8   # the two Blip2-style multi-task heads

    root = jax.random.PRNGKey(0)
    kx, ks, kc = jax.random.split(root, 3)
    x = jax.random.normal(kx, (B, HIDDEN), jnp.float32)
    sent_params = make_task_adapter_params(ks, HIDDEN, SENT_CLASSES)
    cat_params = make_task_adapter_params(kc, HIDDEN, CAT_CLASSES)

    # Weights padded / stacked / cast ONCE (hoisted out of the forward path).
    packed = pack_task_adapter_heads([sent_params, cat_params])

    # Both TaskSpecificAdapter heads fused into ONE pallas_call.
    sent_logits, cat_logits = fused_task_adapters_forward(x, packed)
    sent_logits, cat_logits = jax.block_until_ready((sent_logits, cat_logits))

    assert sent_logits.shape == (B, SENT_CLASSES)
    assert cat_logits.shape == (B, CAT_CLASSES)
    assert jnp.all(jnp.isfinite(sent_logits))
    assert jnp.all(jnp.isfinite(cat_logits))

    # Correctness vs. the PyTorch-faithful reference.
    ref_s = task_specific_adapter_reference(x, sent_params)
    ref_c = task_specific_adapter_reference(x, cat_params)
    assert jnp.allclose(sent_logits, ref_s, atol=5e-2, rtol=5e-2)
    assert jnp.allclose(cat_logits, ref_c, atol=5e-2, rtol=5e-2)

    # Single-head wrapper (exactly the spec module's forward) also works.
    single = jax.block_until_ready(
        task_specific_adapter_forward(x, cat_params))
    assert single.shape == (B, CAT_CLASSES)
    assert jnp.allclose(single, ref_c, atol=5e-2, rtol=5e-2)

    print("KERNEL_OK")
</pallas_src>

<mosaic_0001>
module attributes {stable_mosaic.version = 11 : i64} {
  func.func @_adapter_kernel(%arg0: i32, %arg1: i32, %arg2: memref<16x128xbf16, #tpu.memory_space<vmem>>, %arg3: memref<1x128x128xbf16, #tpu.memory_space<vmem>>, %arg4: memref<1x3x128xf32, #tpu.memory_space<vmem>>, %arg5: memref<1x128x128xbf16, #tpu.memory_space<vmem>>, %arg6: memref<1x1x128xf32, #tpu.memory_space<vmem>>, %arg7: memref<1x16x128xf32, #tpu.memory_space<vmem>>) attributes {dimension_semantics = [#tpu.dimension_semantics<parallel>, #tpu.dimension_semantics<parallel>], iteration_bounds = array<i64: 2, 1>, scalar_prefetch = 0 : i64, scratch_operands = 0 : i64, tpu.core_type = #tpu.core_type<tc>, window_params = [{transform_indices = @transform_0, window_bounds = array<i64: 16, 128>}, {pipeline_mode = #tpu.pipeline_mode<synchronous>, transform_indices = @transform_1, window_bounds = array<i64: 1, 128, 128>}, {pipeline_mode = #tpu.pipeline_mode<synchronous>, transform_indices = @transform_2, window_bounds = array<i64: 1, 3, 128>}, {pipeline_mode = #tpu.pipeline_mode<synchronous>, transform_indices = @transform_3, window_bounds = array<i64: 1, 128, 128>}, {pipeline_mode = #tpu.pipeline_mode<synchronous>, transform_indices = @transform_4, window_bounds = array<i64: 1, 1, 128>}, {transform_indices = @transform_5, window_bounds = array<i64: 1, 16, 128>}]} {
    %c0 = arith.constant 0 : index
    %c0_0 = arith.constant 0 : index
    %0 = vector.load %arg2[%c0, %c0_0] : memref<16x128xbf16, #tpu.memory_space<vmem>>, vector<16x128xbf16>
    %1 = arith.extf %0 : vector<16x128xbf16> to vector<16x128xf32>
    %c0_1 = arith.constant 0 : index
    %c0_2 = arith.constant 0 : index
    %c0_3 = arith.constant 0 : index
    %2 = vector.load %arg4[%c0_1, %c0_2, %c0_3] : memref<1x3x128xf32, #tpu.memory_space<vmem>>, vector<1x3x128xf32>
    %3 = vector.shape_cast %2 : vector<1x3x128xf32> to vector<3x128xf32>
    %4 = vector.extract_strided_slice %3 {offsets = [0, 0], sizes = [1, 128], strides = [1, 1]} : vector<3x128xf32> to vector<1x128xf32>
    %5 = vector.extract_strided_slice %3 {offsets = [1, 0], sizes = [1, 128], strides = [1, 1]} : vector<3x128xf32> to vector<1x128xf32>
    %6 = vector.extract_strided_slice %3 {offsets = [2, 0], sizes = [1, 128], strides = [1, 1]} : vector<3x128xf32> to vector<1x128xf32>
    %c0_4 = arith.constant 0 : index
    %c0_5 = arith.constant 0 : index
    %c0_6 = arith.constant 0 : index
    %7 = vector.load %arg3[%c0_4, %c0_5, %c0_6] : memref<1x128x128xbf16, #tpu.memory_space<vmem>>, vector<1x128x128xbf16>
    %8 = vector.shape_cast %7 : vector<1x128x128xbf16> to vector<128x128xbf16>
    %cst = arith.constant dense<0.000000e+00> : vector<16x128xf32>
    %9 = tpu.matmul %0, %8, %cst {dimension_numbers = #tpu.dot_dimension_numbers<[1], [0], [0], [1], [0, 0, 1, 1], [], []>} : vector<16x128xbf16>, vector<128x128xbf16>, vector<16x128xf32> -> vector<16x128xf32>
    %10 = vector.broadcast %4 : vector<1x128xf32> to vector<16x128xf32>
    %11 = arith.addf %9, %10 : vector<16x128xf32>
    %cst_7 = arith.constant dense<0.000000e+00> : vector<16xf32>
    %12 = vector.multi_reduction <add>, %11, %cst_7 [1] : vector<16x128xf32> to vector<16xf32>
    %13 = vector.shape_cast %12 : vector<16xf32> to vector<16x1xf32>
    %cst_8 = arith.constant 3.125000e-02 : f32
    %14 = vector.broadcast %cst_8 : f32 to vector<16x1xf32>
    %15 = arith.mulf %13, %14 : vector<16x1xf32>
    %16 = vector.broadcast %15 : vector<16x1xf32> to vector<16x128xf32>
    %17 = arith.subf %11, %16 : vector<16x128xf32>
    %18 = tpu.iota {dimensions = array<i32: 1>} : vector<1x128xi32>
    %c32_i32 = arith.constant 32 : i32
    %19 = vector.broadcast %c32_i32 : i32 to vector<1x128xi32>
    %20 = arith.cmpi slt, %18, %19 : vector<1x128xi32>
    %cst_9 = arith.constant 0.000000e+00 : f32
    %21 = vector.shape_cast %20 : vector<1x128xi1> to vector<1x128xi1>
    %22 = vector.broadcast %21 : vector<1x128xi1> to vector<16x128xi1>
    %23 = vector.broadcast %cst_9 : f32 to vector<16x128xf32>
    %24 = arith.select %22, %17, %23 : vector<16x128xi1>, vector<16x128xf32>
    %25 = arith.mulf %24, %24 : vector<16x128xf32>
    %cst_10 = arith.constant dense<0.000000e+00> : vector<16xf32>
    %26 = vector.multi_reduction <add>, %25, %cst_10 [1] : vector<16x128xf32> to vector<16xf32>
    %27 = vector.shape_cast %26 : vector<16xf32> to vector<16x1xf32>
    %cst_11 = arith.constant 3.125000e-02 : f32
    %28 = vector.broadcast %cst_11 : f32 to vector<16x1xf32>
    %29 = arith.mulf %27, %28 : vector<16x1xf32>
    %cst_12 = arith.constant 9.99999974E-6 : f32
    %30 = vector.broadcast %cst_12 : f32 to vector<16x1xf32>
    %31 = arith.addf %29, %30 : vector<16x1xf32>
    %32 = math.rsqrt %31 : vector<16x1xf32>
    %33 = vector.broadcast %32 : vector<16x1xf32> to vector<16x128xf32>
    %34 = arith.mulf %24, %33 : vector<16x128xf32>
    %35 = vector.broadcast %5 : vector<1x128xf32> to vector<16x128xf32>
    %36 = arith.mulf %34, %35 : vector<16x128xf32>
    %37 = vector.broadcast %6 : vector<1x128xf32> to vector<16x128xf32>
    %38 = arith.addf %36, %37 : vector<16x128xf32>
    %cst_13 = arith.constant 5.000000e-01 : f32
    %39 = vector.broadcast %cst_13 : f32 to vector<16x128xf32>
    %40 = arith.mulf %39, %38 : vector<16x128xf32>
    %cst_14 = arith.constant 0.707106769 : f32
    %41 = vector.broadcast %cst_14 : f32 to vector<16x128xf32>
    %42 = arith.mulf %38, %41 : vector<16x128xf32>
    %43 = math.erf %42 : vector<16x128xf32>
    %cst_15 = arith.constant 1.000000e+00 : f32
    %44 = vector.broadcast %cst_15 : f32 to vector<16x128xf32>
    %45 = arith.addf %44, %43 : vector<16x128xf32>
    %46 = arith.mulf %40, %45 : vector<16x128xf32>
    %47 = arith.addf %1, %46 : vector<16x128xf32>
    %48 = arith.truncf %47 : vector<16x128xf32> to vector<16x128xbf16>
    %c0_16 = arith.constant 0 : index
    %c0_17 = arith.constant 0 : index
    %c0_18 = arith.constant 0 : index
    %49 = vector.load %arg5[%c0_16, %c0_17, %c0_18] : memref<1x128x128xbf16, #tpu.memory_space<vmem>>, vector<1x128x128xbf16>
    %50 = vector.shape_cast %49 : vector<1x128x128xbf16> to vector<128x128xbf16>
    %cst_19 = arith.constant dense<0.000000e+00> : vector<16x128xf32>
    %51 = tpu.matmul %48, %50, %cst_19 {dimension_numbers = #tpu.dot_dimension_numbers<[1], [0], [0], [1], [0, 0, 1, 1], [], []>} : vector<16x128xbf16>, vector<128x128xbf16>, vector<16x128xf32> -> vector<16x128xf32>
    %c0_20 = arith.constant 0 : index
    %c0_21 = arith.constant 0 : index
    %c0_22 = arith.constant 0 : index
    %52 = vector.load %arg6[%c0_20, %c0_21, %c0_22] : memref<1x1x128xf32, #tpu.memory_space<vmem>>, vector<1x1x128xf32>
    %53 = vector.shape_cast %52 : vector<1x1x128xf32> to vector<1x128xf32>
    %54 = vector.broadcast %53 : vector<1x128xf32> to vector<16x128xf32>
    %55 = arith.addf %51, %54 : vector<16x128xf32>
    %c0_23 = arith.constant 0 : index
    %c0_24 = arith.constant 0 : index
    %c0_25 = arith.constant 0 : index
    %56 = vector.load %arg7[%c0_23, %c0_24, %c0_25] : memref<1x16x128xf32, #tpu.memory_space<vmem>>, vector<1x16x128xf32>
    %57 = vector.shape_cast %56 : vector<1x16x128xf32> to vector<16x128xf32>
    %58 = vector.shape_cast %55 : vector<16x128xf32> to vector<1x16x128xf32>
    tpu.vector_store %arg7[%c0_23, %c0_24, %c0_25], %58 {strides = array<i32>} : memref<1x16x128xf32, #tpu.memory_space<vmem>>, vector<1x16x128xf32>,
    return
  }
  func.func @transform_0(%arg0: i32, %arg1: i32) -> (i32, i32) {
    %c0_i32 = arith.constant 0 : i32
    %c0_i32_0 = arith.constant 0 : i32
    return %arg1, %c0_i32 : i32, i32
  }
  func.func @transform_1(%arg0: i32, %arg1: i32) -> (i32, i32, i32) {
    %c0_i32 = arith.constant 0 : i32
    %c0_i32_0 = arith.constant 0 : i32
    %c0_i32_1 = arith.constant 0 : i32
    return %arg0, %c0_i32, %c0_i32_0 : i32, i32, i32
  }
  func.func @transform_2(%arg0: i32, %arg1: i32) -> (i32, i32, i32) {
    %c0_i32 = arith.constant 0 : i32
    %c0_i32_0 = arith.constant 0 : i32
    %c0_i32_1 = arith.constant 0 : i32
    return %arg0, %c0_i32, %c0_i32_0 : i32, i32, i32
  }
  func.func @transform_3(%arg0: i32, %arg1: i32) -> (i32, i32, i32) {
    %c0_i32 = arith.constant 0 : i32
    %c0_i32_0 = arith.constant 0 : i32
    %c0_i32_1 = arith.constant 0 : i32
    return %arg0, %c0_i32, %c0_i32_0 : i32, i32, i32
  }
  func.func @transform_4(%arg0: i32, %arg1: i32) -> (i32, i32, i32) {
    %c0_i32 = arith.constant 0 : i32
    %c0_i32_0 = arith.constant 0 : i32
    %c0_i32_1 = arith.constant 0 : i32
    return %arg0, %c0_i32, %c0_i32_0 : i32, i32, i32
  }
  func.func @transform_5(%arg0: i32, %arg1: i32) -> (i32, i32, i32) {
    %c0_i32 = arith.constant 0 : i32
    %c0_i32_0 = arith.constant 0 : i32
    return %arg0, %arg1, %c0_i32 : i32, i32, i32
  }
}

module attributes {stable_mosaic.version = 11 : i64} {
  func.func @_adapter_kernel(%arg0: i32, %arg1: i32, %arg2: memref<16x128xbf16, #tpu.memory_space<vmem>>, %arg3: memref<1x128x128xbf16, #tpu.memory_space<vmem>>, %arg4: memref<1x3x128xf32, #tpu.memory_space<vmem>>, %arg5: memref<1x128x128xbf16, #tpu.memory_space<vmem>>, %arg6: memref<1x1x128xf32, #tpu.memory_space<vmem>>, %arg7: memref<1x16x128xf32, #tpu.memory_space<vmem>>) attributes {dimension_semantics = [#tpu.dimension_semantics<parallel>, #tpu.dimension_semantics<parallel>], iteration_bounds = array<i64: 2, 1>, scalar_prefetch = 0 : i64, scratch_operands = 0 : i64, tpu.core_type = #tpu.core_type<tc>, window_params = [{transform_indices = @transform_0, window_bounds = array<i64: 16, 128>}, {transform_indices = @transform_1, window_bounds = array<i64: 1, 128, 128>}, {transform_indices = @transform_2, window_bounds = array<i64: 1, 3, 128>}, {transform_indices = @transform_3, window_bounds = array<i64: 1, 128, 128>}, {transform_indices = @transform_4, window_bounds = array<i64: 1, 1, 128>}, {transform_indices = @transform_5, window_bounds = array<i64: 1, 16, 128>}]} {
    %c0 = arith.constant 0 : index
    %c0_0 = arith.constant 0 : index
    %0 = vector.load %arg2[%c0, %c0_0] : memref<16x128xbf16, #tpu.memory_space<vmem>>, vector<16x128xbf16>
    %1 = arith.extf %0 : vector<16x128xbf16> to vector<16x128xf32>
    %c0_1 = arith.constant 0 : index
    %c0_2 = arith.constant 0 : index
    %c0_3 = arith.constant 0 : index
    %2 = vector.load %arg4[%c0_1, %c0_2, %c0_3] : memref<1x3x128xf32, #tpu.memory_space<vmem>>, vector<1x3x128xf32>
    %3 = vector.shape_cast %2 : vector<1x3x128xf32> to vector<3x128xf32>
    %4 = vector.extract_strided_slice %3 {offsets = [0, 0], sizes = [1, 128], strides = [1, 1]} : vector<3x128xf32> to vector<1x128xf32>
    %5 = vector.extract_strided_slice %3 {offsets = [1, 0], sizes = [1, 128], strides = [1, 1]} : vector<3x128xf32> to vector<1x128xf32>
    %6 = vector.extract_strided_slice %3 {offsets = [2, 0], sizes = [1, 128], strides = [1, 1]} : vector<3x128xf32> to vector<1x128xf32>
    %c0_4 = arith.constant 0 : index
    %c0_5 = arith.constant 0 : index
    %c0_6 = arith.constant 0 : index
    %7 = vector.load %arg3[%c0_4, %c0_5, %c0_6] : memref<1x128x128xbf16, #tpu.memory_space<vmem>>, vector<1x128x128xbf16>
    %8 = vector.shape_cast %7 : vector<1x128x128xbf16> to vector<128x128xbf16>
    %cst = arith.constant dense<0.000000e+00> : vector<16x128xf32>
    %9 = tpu.matmul %0, %8, %cst {dimension_numbers = #tpu.dot_dimension_numbers<[1], [0], [0], [1], [0, 0, 1, 1], [], []>} : vector<16x128xbf16>, vector<128x128xbf16>, vector<16x128xf32> -> vector<16x128xf32>
    %10 = vector.broadcast %4 : vector<1x128xf32> to vector<16x128xf32>
    %11 = arith.addf %9, %10 : vector<16x128xf32>
    %cst_7 = arith.constant dense<0.000000e+00> : vector<16xf32>
    %12 = vector.multi_reduction <add>, %11, %cst_7 [1] : vector<16x128xf32> to vector<16xf32>
    %13 = vector.shape_cast %12 : vector<16xf32> to vector<16x1xf32>
    %cst_8 = arith.constant 3.125000e-02 : f32
    %14 = vector.broadcast %cst_8 : f32 to vector<16x1xf32>
    %15 = arith.mulf %13, %14 : vector<16x1xf32>
    %16 = vector.broadcast %15 : vector<16x1xf32> to vector<16x128xf32>
    %17 = arith.subf %11, %16 : vector<16x128xf32>
    %18 = tpu.iota {dimensions = array<i32: 1>} : vector<1x128xi32>
    %c32_i32 = arith.constant 32 : i32
    %19 = vector.broadcast %c32_i32 : i32 to vector<1x128xi32>
    %20 = arith.cmpi slt, %18, %19 : vector<1x128xi32>
    %cst_9 = arith.constant 0.000000e+00 : f32
    %21 = vector.shape_cast %20 : vector<1x128xi1> to vector<1x128xi1>
    %22 = vector.broadcast %21 : vector<1x128xi1> to vector<16x128xi1>
    %23 = vector.broadcast %cst_9 : f32 to vector<16x128xf32>
    %24 = arith.select %22, %17, %23 : vector<16x128xi1>, vector<16x128xf32>
    %25 = arith.mulf %24, %24 : vector<16x128xf32>
    %cst_10 = arith.constant dense<0.000000e+00> : vector<16xf32>
    %26 = vector.multi_reduction <add>, %25, %cst_10 [1] : vector<16x128xf32> to vector<16xf32>
    %27 = vector.shape_cast %26 : vector<16xf32> to vector<16x1xf32>
    %cst_11 = arith.constant 3.125000e-02 : f32
    %28 = vector.broadcast %cst_11 : f32 to vector<16x1xf32>
    %29 = arith.mulf %27, %28 : vector<16x1xf32>
    %cst_12 = arith.constant 9.99999974E-6 : f32
    %30 = vector.broadcast %cst_12 : f32 to vector<16x1xf32>
    %31 = arith.addf %29, %30 : vector<16x1xf32>
    %32 = math.rsqrt %31 : vector<16x1xf32>
    %33 = vector.broadcast %32 : vector<16x1xf32> to vector<16x128xf32>
    %34 = arith.mulf %24, %33 : vector<16x128xf32>
    %35 = vector.broadcast %5 : vector<1x128xf32> to vector<16x128xf32>
    %36 = arith.mulf %34, %35 : vector<16x128xf32>
    %37 = vector.broadcast %6 : vector<1x128xf32> to vector<16x128xf32>
    %38 = arith.addf %36, %37 : vector<16x128xf32>
    %cst_13 = arith.constant 5.000000e-01 : f32
    %39 = vector.broadcast %cst_13 : f32 to vector<16x128xf32>
    %40 = arith.mulf %39, %38 : vector<16x128xf32>
    %cst_14 = arith.constant 0.707106769 : f32
    %41 = vector.broadcast %cst_14 : f32 to vector<16x128xf32>
    %42 = arith.mulf %38, %41 : vector<16x128xf32>
    %43 = math.erf %42 : vector<16x128xf32>
    %cst_15 = arith.constant 1.000000e+00 : f32
    %44 = vector.broadcast %cst_15 : f32 to vector<16x128xf32>
    %45 = arith.addf %44, %43 : vector<16x128xf32>
    %46 = arith.mulf %40, %45 : vector<16x128xf32>
    %47 = arith.addf %1, %46 : vector<16x128xf32>
    %48 = arith.truncf %47 : vector<16x128xf32> to vector<16x128xbf16>
    %c0_16 = arith.constant 0 : index
    %c0_17 = arith.constant 0 : index
    %c0_18 = arith.constant 0 : index
    %49 = vector.load %arg5[%c0_16, %c0_17, %c0_18] : memref<1x128x128xbf16, #tpu.memory_space<vmem>>, vector<1x128x128xbf16>
    %50 = vector.shape_cast %49 : vector<1x128x128xbf16> to vector<128x128xbf16>
    %cst_19 = arith.constant dense<0.000000e+00> : vector<16x128xf32>
    %51 = tpu.matmul %48, %50, %cst_19 {dimension_numbers = #tpu.dot_dimension_numbers<[1], [0], [0], [1], [0, 0, 1, 1], [], []>} : vector<16x128xbf16>, vector<128x128xbf16>, vector<16x128xf32> -> vector<16x128xf32>
    %c0_20 = arith.constant 0 : index
    %c0_21 = arith.constant 0 : index
    %c0_22 = arith.constant 0 : index
    %52 = vector.load %arg6[%c0_20, %c0_21, %c0_22] : memref<1x1x128xf32, #tpu.memory_space<vmem>>, vector<1x1x128xf32>
    %53 = vector.shape_cast %52 : vector<1x1x128xf32> to vector<1x128xf32>
    %54 = vector.broadcast %53 : vector<1x128xf32> to vector<16x128xf32>
    %55 = arith.addf %51, %54 : vector<16x128xf32>
    %c0_23 = arith.constant 0 : index
    %c0_24 = arith.constant 0 : index
    %c0_25 = arith.constant 0 : index
    %56 = vector.load %arg7[%c0_23, %c0_24, %c0_25] : memref<1x16x128xf32, #tpu.memory_space<vmem>>, vector<1x16x128xf32>
    %57 = vector.shape_cast %56 : vector<1x16x128xf32> to vector<16x128xf32>
    %58 = vector.shape_cast %55 : vector<16x128xf32> to vector<1x16x128xf32>
    tpu.vector_store %arg7[%c0_23, %c0_24, %c0_25], %58 {strides = array<i32>} : memref<1x16x128xf32, #tpu.memory_space<vmem>>, vector<1x16x128xf32>,
    return
  }
  func.func @transform_0(%arg0: i32, %arg1: i32) -> (i32, i32) {
    %c0_i32 = arith.constant 0 : i32
    %c0_i32_0 = arith.constant 0 : i32
    return %arg1, %c0_i32 : i32, i32
  }
  func.func @transform_1(%arg0: i32, %arg1: i32) -> (i32, i32, i32) {
    %c0_i32 = arith.constant 0 : i32
    %c0_i32_0 = arith.constant 0 : i32
    %c0_i32_1 = arith.constant 0 : i32
    return %arg0, %c0_i32, %c0_i32_0 : i32, i32, i32
  }
  func.func @transform_2(%arg0: i32, %arg1: i32) -> (i32, i32, i32) {
    %c0_i32 = arith.constant 0 : i32
    %c0_i32_0 = arith.constant 0 : i32
    %c0_i32_1 = arith.constant 0 : i32
    return %arg0, %c0_i32, %c0_i32_0 : i32, i32, i32
  }
  func.func @transform_3(%arg0: i32, %arg1: i32) -> (i32, i32, i32) {
    %c0_i32 = arith.constant 0 : i32
    %c0_i32_0 = arith.constant 0 : i32
    %c0_i32_1 = arith.constant 0 : i32
    return %arg0, %c0_i32, %c0_i32_0 : i32, i32, i32
  }
  func.func @transform_4(%arg0: i32, %arg1: i32) -> (i32, i32, i32) {
    %c0_i32 = arith.constant 0 : i32
    %c0_i32_0 = arith.constant 0 : i32
    %c0_i32_1 = arith.constant 0 : i32
    return %arg0, %c0_i32, %c0_i32_0 : i32, i32, i32
  }
  func.func @transform_5(%arg0: i32, %arg1: i32) -> (i32, i32, i32) {
    %c0_i32 = arith.constant 0 : i32
    %c0_i32_0 = arith.constant 0 : i32
    return %arg0, %arg1, %c0_i32 : i32, i32, i32
  }
}

</mosaic_0001>

<bundles_post_ra>
// kernel: tpu_custom_call.1
= control target key start
LH: loop header
LB: loop body
LE: loop exit
PB: predicated region body
PF: predicated region fallthrough
CT: control target
= control target key end

     0   :  { %10 = vsyncpa [#allocation3], 0  ;;  %s1383_s0 = inlined_call_operand.vmem [shape: bf16[16,128], index: 0, kind: input, shape index: {}]   ;;  %s1384_s1 = inlined_call_operand.hbm [shape: bf16[2,128,128], index: 1, kind: input, shape index: {}]   ;;  %s1385_s2 = inlined_call_operand.vmem [shape: f32[2,3,128], index: 2, kind: input, shape index: {}]   ;;  %s1386_s3 = inlined_call_operand.hbm [shape: bf16[2,128,128], index: 3, kind: input, shape index: {}]   ;;  %s1387_s4 = inlined_call_operand.vmem [shape: f32[2,1,128], index: 4, kind: input, shape index: {}]   ;;  %s1388_s5 = inlined_call_operand.hbm [shape: f32[2,16,128], index: 5, kind: output, shape index: {}]  }
   0x1   :  { %11 = vsyncpa [#allocation6], 0 }
   0x2   :  { %12 = vsyncpa [#allocation4], 0 }
   0x3   :  { %14 = vsyncpa [#allocation4 + $0x1], 0  ;;  %s1133_s18 = smov 0   ;;  %s1135_s19 = smov 0  }
   0x4   :  { %s1137_s20 = smov 0   ;;  %s1139_s21 = smov 0  }
   0x5   :  { %s1141_s22 = smov 0   ;;  %s1143_s23 = smov 0  }
   0x6 LB: > { %s751_s24 = sadd.s32 4294967295, %s1092_s23   ;;  %s752_s25 = sadd.s32 4294967294, %s1092_s23   ;;  %s1092_s23 = sphi %s1143_s23, %s20_s23   ;;  %s1088_s22 = sphi %s1141_s22, %s1409_s22   ;;  %s1084_s21 = sphi %s1139_s21, %s1408_s21   ;;  %s1080_s20 = sphi %s1137_s20, %s1407_s20   ;;  %s1076_s19 = sphi %s1135_s19, %s1406_s19   ;;  %s1072_s18 = sphi %s1133_s18, %s1405_s18  }
   0x7   : > { %s32_s26 = sadd.s32 1, %s1088_s22  ;;  %s65_s27 = sadd.s32 1, %s1080_s20 }
   0x8   : > { %p34_p0 = scmp.ge.s32.totalorder %s32_s26, 2  ;;  %p78_p1 = scmp.ne.s32.totalorder %s1076_s19, %s1072_s18 }
   0x9   : > { %p181_p2 = scmp.ne.s32.totalorder %s1080_s20, %s1076_s19  ;;  %p79_p3 = scmp.eq.s32.totalorder %s751_s24, 0 }
   0xa   : > { %s1411_s26 = smov (%p34_p0, %s32_s26), 0  ;;  %p182_p4 = scmp.eq.s32.totalorder %s751_s24, 1 }
   0xb   : > { %1394 = sst [smem:[#allocation11_spill]] %s1411_s26  ;;  %s62_s28 = ssub.s32 %s1088_s22, %s1411_s26 }
   0xc   : > { %p188_p5 = scmp.eq.s32.totalorder %s752_s25, 1  ;;  %p63_p6 = scmp.eq.s32.totalorder %s62_s28, 0 }
   0xd   : > { %p1175_p7 = por %p182_p4, %p181_p2  ;;  %p753_p9 = scmp.ge.s32.totalorder %s1092_s23, 1 }
   0xe   : > { %p1182_p8 = por %p188_p5, %p78_p1  ;;  %p195_p10 = scmp.lt.s32.totalorder %s1092_s23, 3 }
   0xf   : > { %s1395_s29 = scalar_select %p1175_p7, 1, 0 }
  0x10   : > { %s1396_s30 = scalar_select %p1182_p8, 1, 0 }
  0x11   : > { %s1188_s6 = scalar_select %p63_p6, %s1080_s20, %s65_s27  }
  0x12   : > { %s785_s7 = sshll.u32 %s1084_s21, 10  ;;  %p1195_p11 = por %p79_p3, %p78_p1 }
  0x13   : > { %p1199_p12 = pnand %p753_p9, %p195_p10  ;;  %s1094_s10 = smov [#allocation2]  }
  0x14   : > { %s1397_s8 = scalar_select %p1195_p11, 1, 0 }
  0x15   : > { %s1398_s9 = scalar_select %p1199_p12, 1, 0 }
  0x16   : > { %s219_s11 = sshll.u32 %s1094_s10, 4  ;;  %s1206_s14 = scalar_lea.hbm %s1384_s1, %s785_s7  ;;  %s1208_s11 = int_to_ptr.vmem [resolvable:$true] %s219_s11 }
  0x17   : > { %p852_p13 = pneg %p1199_p12  ;;  %s1095_s16 = smov [#allocation5]  }
  0x18   : > { %s242_s17 = sshll.u32 %s1095_s16, 4  ;;  %s1221_s27 = scalar_lea.hbm %s1386_s3, %s785_s7  ;;  %s1223_s17 = int_to_ptr.vmem [resolvable:$true] %s242_s17 }
  0x19   : > { %p1214_p0 = pnand %p852_p13, %p1195_p11  ;;  %s946_s28 = scalar_lea.hbm %s1206_s14, 1024 }
  0x1a   : > { %p947_p1 = scmp.ne.s32.totalorder %s1206_s14, %s946_s28  ;;  %s951_s13 = scalar_lea.hbm %s1384_s1, 2048 }
  0x1b   : > { %p948_p2 = pneg %p1214_p0  ;;  %p952_p5 = scmp.lt.u32.totalorder %s1206_s14, %s1384_s1 }
  0x1c   : > { %p953_p6 = scmp.lt.u32.totalorder %s951_s13, %s946_s28  ;;  %p955_p10 = scmp.lt.u32.totalorder %s946_s28, %s1206_s14 }
  0x1d   : > { %p949_p3 = pnand %p948_p2, %p947_p1 }
  0x1e   : > { %p954_p9 = por %p953_p6, %p952_p5 }
  0x1f   : > { %p950_p4 = pneg %p949_p3 }
  0x20   : > { %p956_p13 = por %p955_p10, %p954_p9 }
  0x22   : > { %p957_p8 = pnand %p956_p13, %p950_p4 }
  0x24   : > { %960 = shalt.err (!%p957_p8)
}
  0x25   : > { %s961_s7 = scalar_lea.vmem %s1208_s11, 1024  ;;  %p969_p11 = scmp.lt.s32.totalorder %s1208_s11, %s1208_s11 }
  0x26   : > { %p962_p1 = scmp.ne.s32.totalorder %s1208_s11, %s961_s7  ;;  %p970_p12 = scmp.lt.s32.totalorder %s961_s7, %s961_s7 }
  0x28   : > { %p964_p3 = pnand %p962_p1, %p948_p2  ;;  %p971_p5 = por %p970_p12, %p969_p11 }
  0x2a   : > { %p965_p7 = pneg %p964_p3 }
  0x2c   : > { %p972_p6 = pnand %p971_p5, %p965_p7 }
  0x2e   : > { %975 = shalt.err (!%p972_p6)
}
  0x2f   : > { %s1096_s26 = smov 64   ;;  %s1097_s24 = smov 4  }
  0x30   : > { %855 = dma.hbm_to_vmem [thread:$0]  (!%p1214_p0), %s1206_s14, 1024, %s1208_s11, [#allocation3], %s1096_s26, %s1096_s26, %s1097_s24  }
  0x31   : > { %s976_s25 = scalar_lea.hbm %s1221_s27, 1024  ;;  %s981_s12 = scalar_lea.hbm %s1386_s3, 2048 }
  0x32   : > { %p977_p8 = scmp.ne.s32.totalorder %s1221_s27, %s976_s25  ;;  %p982_p7 = scmp.lt.u32.totalorder %s1221_s27, %s1386_s3 }
  0x33   : > { %p983_p12 = scmp.lt.u32.totalorder %s981_s12, %s976_s25  ;;  %p985_p10 = scmp.lt.u32.totalorder %s976_s25, %s1221_s27 }
  0x34   : > { %p979_p4 = pnand %p977_p8, %p948_p2 }
  0x35   : > { %p984_p9 = por %p983_p12, %p982_p7 }
  0x36   : > { %p980_p11 = pneg %p979_p4 }
  0x37   : > { %p986_p13 = por %p985_p10, %p984_p9 }
  0x39   : > { %p987_p1 = pnand %p986_p13, %p980_p11 }
  0x3b   : > { %990 = shalt.err (!%p987_p1)
}
  0x3c   : > { %s991_s11 = scalar_lea.vmem %s1223_s17, 1024  ;;  %p999_p8 = scmp.lt.s32.totalorder %s1223_s17, %s1223_s17 }
  0x3d   : > { %p992_p3 = scmp.ne.s32.totalorder %s1223_s17, %s991_s11  ;;  %p1000_p4 = scmp.lt.s32.totalorder %s991_s11, %s991_s11 }
  0x3f   : > { %p994_p5 = pnand %p992_p3, %p948_p2  ;;  %p1001_p7 = por %p1000_p4, %p999_p8 }
  0x41   : > { %p995_p6 = pneg %p994_p5 }
  0x43   : > { %p1002_p12 = pnand %p1001_p7, %p995_p6 }
  0x45   : > { %1005 = shalt.err (!%p1002_p12)
}
  0x46   : > { %858 = dma.hbm_to_vmem [thread:$0]  (!%p1214_p0), %s1221_s27, 1024, %s1223_s17, [#allocation6], %s1096_s26, %s1096_s26, %s1097_s24  }
  0x47   : > { %p1400_p11 = scmp.ne.s32.totalorder %s1398_s9, 0 }
  0x48   : > { %p1401_p9 = scmp.ne.s32.totalorder (!%p1400_p11), %s1397_s8, 0 }
  0x49   : > { %264 = sbr.rel (%p1400_p11) target bundleno = 899 (0x383), region = 40 }
  0x50   : > { %1059 = dma.done.wait (%p1401_p9), [#allocation3], 1024  }
  0x51   : > { %1061 = vsyncadd (%p1401_p9), [#allocation3], 4294966272 }
  0x52   : > { %1063 = dma.done.wait (%p1401_p9), [#allocation6], 1024  }
  0x53   : > { %1065 = vsyncadd (%p1401_p9), [#allocation6], 4294966272  ;;  %v1098_v0 = vmov 0.0   ;;  %vm1099_vm0 = vmmov 0   ;;  %v920_v1 = vld [vmem:[#allocation2] sm:$0xff]   ;;  %v921_v2 = vld [vmem:[#allocation2 + $0x8] sm:$0xff]   ;;  %v339_v10 = vlaneseq }
  0x54   : > { %806 = vmatprep.subr.bf16.mxu0 %v1098_v0  ;;  %822 = vmatprep.mubr.msk.bf16.mxu0 %vm1099_vm0, %v1098_v0  ;;  %v922_v3 = vld [vmem:[#allocation2 + $0x10] sm:$0xff]   ;;  %v923_v4 = vld [vmem:[#allocation2 + $0x18] sm:$0xff]   ;;  %v924_v5 = vld [vmem:[#allocation2 + $0x20] sm:$0xff]   ;;  %p309_p0 = scmp.lt.s32.totalorder %s1084_s21, 1  ;;  %s300_s26 = sand.u32 1, %s1076_s19  }
  0x55   : > { %826 = vmatprep.subr.bf16.mxu1 %v1098_v0  ;;  %842 = vmatprep.mubr.msk.bf16.mxu1 %vm1099_vm0, %v1098_v0  ;;  %v925_v6 = vld [vmem:[#allocation2 + $0x28] sm:$0xff]   ;;  %v926_v7 = vld [vmem:[#allocation2 + $0x30] sm:$0xff]   ;;  %v927_v8 = vld [vmem:[#allocation2 + $0x38] sm:$0xff]   ;;  %v1307_v11 = vshrl.u32 %v339_v10, 7  ;;  %v447_v21 = vand.u32 127, %v339_v10  ;;  %s760_s24 = sshll.u32 %s300_s26, 4 }
  0x56   : > { %807 = vmatpush3.bf16.msra.mxu0 %v920_v1  ;;  %v1298_v9 = vld [vmem:[%s1383_s0] sm:$0xff]   ;;  %s1304_s14 = scalar_select %p309_p0, %s1084_s21, 1  ;;  %v930_v33 = vld [vmem:[#allocation5 + $0x8] sm:$0xff]   ;;  %v931_v34 = vld [vmem:[#allocation5 + $0x10] sm:$0xff]  }
  0x57   : > { %808 = vmatprep.subr.bf16.mxu0 %v1098_v0  ;;  %v341_v12 = vsub.s32 0, %v1307_v11  ;;  %vm448_vm1 = vcmp.lt.s32.totalorder %v447_v21, 32  ;;  %v929_v32 = vld [vmem:[#allocation5] sm:$0xff]   ;;  %v932_v35 = vld [vmem:[#allocation5 + $0x18] sm:$0xff]   ;;  %v934_v37 = vld [vmem:[#allocation5 + $0x28] sm:$0xff]   ;;  %v469_v46 = vsub.s32 1, %v1307_v11  ;;  %v321_v1 = vunpack.c.h.bf16 %v1298_v9 }
  0x58   : > { %s761_s15 = sshll.u32 %s1304_s14, 2  ;;  %827 = vmatpush3.bf16.msra.mxu1 %v929_v32  ;;  %v933_v36 = vld [vmem:[#allocation5 + $0x20] sm:$0xff]   ;;  %v935_v38 = vld [vmem:[#allocation5 + $0x30] sm:$0xff]   ;;  %v936_v39 = vld [vmem:[#allocation5 + $0x38] sm:$0xff]   ;;  %v475_v47 = vsub.s32 2, %v1307_v11  ;;  %s315_s10 = scalar_lea.vmem %s1387_s4, %s1304_s14 }
  0x59   : > { %s312_s7 = scalar_lea.vmem %s1385_s2, %s761_s15  ;;  %828 = vmatprep.subr.bf16.mxu1 %v1098_v0  ;;  %v771_v10 = vld [vmem:[%s315_s10] ss:$0 sm:$0xff]  ;;  %s302_s12 = scalar_lea.vmem [#allocation7], %s760_s24 }
  0x5a   : > { %809 = vmatpush3.bf16.msra.mxu0 %v921_v2  ;;  %v322_v13 = vld [vmem:[%s312_s7] sm:$0x7]  ;;  %s622_s13 = sshll.u32 %s302_s12, 4  ;;  %s787_s16 = sshll.u32 %s1084_s21, 8  ;;  %s1330_s13 = int_to_ptr.vmem [resolvable:$true] %s622_s13 }
  0x5b   : > { %810 = vmatprep.subr.bf16.mxu0 %v1098_v0  ;;  %v342_v14 = vrot.slane %v322_v13, %v341_v12  ;;  %v470_v48 = vrot.slane %v322_v13, %v469_v46  ;;  %v476_v50 = vrot.slane %v322_v13, %v475_v47  ;;  %s1335_s9 = scalar_lea.hbm %s1388_s5, %s787_s16  ;;  %s1337_s14 = scalar_lea.sflag [#allocation4], %s300_s26 }
  0x5c   : > { %829 = vmatpush3.bf16.msra.mxu1 %v930_v33  ;;  %s1006_s21 = scalar_lea.vmem %s1330_s13, 256  ;;  %p1402_p10 = scmp.ne.s32.totalorder %s1395_s29, 0 }
  0x5d   : > { %830 = vmatprep.subr.bf16.mxu1 %v1098_v0  ;;  %p1007_p2 = scmp.ne.s32.totalorder %s1330_s13, %s1006_s21  ;;  %s1100_s15 = smov [#allocation7]  }
  0x5e   : > { %811 = vmatpush3.bf16.msra.mxu0 %v922_v3  ;;  %s1010_s17 = sshll.u32 %s1100_s15, 4  ;;  %s1011_s17 = int_to_ptr.vmem [resolvable:$false] %s1010_s17 }
  0x5f   : > { %812 = vmatprep.subr.bf16.mxu0 %v1098_v0  ;;  %p1008_p13 = pnand %p1007_p2, %p1402_p10  ;;  %s1012_s27 = scalar_lea.vmem %s1011_s17, 512 }
  0x60   : > { %831 = vmatpush3.bf16.msra.mxu1 %v931_v34  ;;  %p1013_p3 = scmp.lt.s32.totalorder %s1330_s13, %s1011_s17  ;;  %p1014_p5 = scmp.lt.s32.totalorder %s1012_s27, %s1006_s21 }
  0x61   : > { %832 = vmatprep.subr.bf16.mxu1 %v1098_v0  ;;  %p1009_p1 = pneg %p1008_p13 }
  0x62   : > { %813 = vmatpush3.bf16.msra.mxu0 %v923_v4  ;;  %p1015_p6 = por %p1014_p5, %p1013_p3 }
  0x63   : > { %814 = vmatprep.subr.bf16.mxu0 %v1098_v0 }
  0x64   : > { %833 = vmatpush3.bf16.msra.mxu1 %v932_v35  ;;  %p1016_p8 = pnand %p1015_p6, %p1009_p1 }
  0x65   : > { %834 = vmatprep.subr.bf16.mxu1 %v1098_v0 }
  0x66   : > { %815 = vmatpush3.bf16.msra.mxu0 %v924_v5 }
  0x67   : > { %816 = vmatprep.subr.bf16.mxu0 %v1098_v0 }
  0x68   : > { %835 = vmatpush3.bf16.msra.mxu1 %v933_v36 }
  0x69   : > { %836 = vmatprep.subr.bf16.mxu1 %v1098_v0 }
  0x6a   : > { %817 = vmatpush3.bf16.msra.mxu0 %v925_v6 }
  0x6b   : > { %818 = vmatprep.subr.bf16.mxu0 %v1098_v0 }
  0x6c   : > { %837 = vmatpush3.bf16.msra.mxu1 %v934_v37 }
  0x6d   : > { %838 = vmatprep.subr.bf16.mxu1 %v1098_v0 }
  0x6e   : > { %819 = vmatpush3.bf16.msra.mxu0 %v926_v7 }
  0x6f   : > { %820 = vmatprep.subr.bf16.mxu0 %v1098_v0 }
  0x70   : > { %839 = vmatpush3.bf16.msra.mxu1 %v935_v38 }
  0x71   : > { %840 = vmatprep.subr.bf16.mxu1 %v1098_v0  ;;  %v320_v0 = vunpack.c.l.bf16 %v1298_v9 }
  0x72   : > { %821 = vmatpush3.bf16.msra.mxu0 %v927_v8 }
  0x74   : > { %841 = vmatpush3.bf16.msra.mxu1 %v936_v39 }
  0x75   : > { %823 = vmatmul.mubr.bf16.vlgmr.msra.gmra.mrb[0].mxu0 %v1298_v9 }
 0x148   : > { %v431_v15 = vpop.f32.mrb[0].mxu0 }
 0x149   : > { %v432_v16 = vadd.f32 %v431_v15, %v342_v14  ;;  %v824_v17 = vpop.f32.mrb[1].mxu0 }
 0x14a   : > { %v434_v18 = vpop.f32.mrb[2].mxu0 }
 0x14b   : > { %438 = vadd.xlane.f32.xlu0 %v432_v16  ;;  %v825_v19 = vpop.f32.mrb[3].mxu0  ;;  %v435_v20 = vadd.f32 %v434_v18, %v342_v14 }
 0x14f   : > { %440 = vadd.xlane.f32.xlu0 %v435_v20 }
 0x1d8   : > { %v439_v22 = vpop.xlane.xlu0 %438 }
 0x1d9   : > { %v442_v23 = vmul.f32 0.03125, %v439_v22 }
 0x1db   : > { %v444_v24 = vsub.f32 %v432_v16, %v442_v23 }
 0x1dc   : > { %v441_v25 = vpop.xlane.xlu0 %440 }
 0x1dd   : > { %v443_v26 = vmul.f32 0.03125, %v441_v25  ;;  %v451_v27 = vsel %vm448_vm1, %v444_v24, 0.0 }
 0x1de   : > { %v453_v28 = vmul.f32 %v451_v27, %v451_v27 }
 0x1df   : > { %v445_v29 = vsub.f32 %v435_v20, %v443_v26 }
 0x1e0   : > { %455 = vadd.xlane.f32.xlu1 %v453_v28 }
 0x1e1   : > { %v452_v30 = vsel %vm448_vm1, %v445_v29, 0.0 }
 0x1e2   : > { %v454_v31 = vmul.f32 %v452_v30, %v452_v30 }
 0x1e4   : > { %457 = vadd.xlane.f32.xlu1 %v454_v31 }
 0x26d   : > { %v456_v40 = vpop.xlane.xlu1 %455 }
 0x26e   : > { %v459_v41 = vmul.f32 0.03125, %v456_v40 }
 0x270   : > { %v461_v42 = vadd.f32 1e-05, %v459_v41 }
 0x271   : > { %v458_v43 = vpop.xlane.xlu1 %457 }
 0x272   : > { %938 = vrsqrt.f32 %v461_v42  ;;  %v460_v44 = vmul.f32 0.03125, %v458_v43 }
 0x274   : > { %v462_v45 = vadd.f32 1e-05, %v460_v44 }
 0x276   : > { %940 = vrsqrt.f32 %v462_v45 }
 0x27c   : > { %v939_v49 = vpop.eup %938 }
 0x27d   : > { %v465_v51 = vmul.f32 %v939_v49, %v451_v27 }
 0x27f   : > { %v471_v52 = vmul.f32 %v470_v48, %v465_v51 }
 0x280   : > { %v941_v53 = vpop.eup %940 }
 0x281   : > { %v466_v54 = vmul.f32 %v941_v53, %v452_v30  ;;  %v477_v55 = vadd.f32 %v476_v50, %v471_v52 }
 0x283   : > { %v472_v56 = vmul.f32 %v470_v48, %v466_v54  ;;  %v481_v57 = vmul.f32 0.70710677, %v477_v55  ;;  %v479_v62 = vmul.f32 0.5, %v477_v55 }
 0x285   : > { %v478_v58 = vadd.f32 %v476_v50, %v472_v56  ;;  %942 = verf.f32 %v481_v57 }
 0x287   : > { %v482_v59 = vmul.f32 0.70710677, %v478_v58  ;;  %v480_v2 = vmul.f32 0.5, %v478_v58 }
 0x289   : > { %944 = verf.f32 %v482_v59 }
 0x28f   : > { %v943_v60 = vpop.eup %942 }
 0x290   : > { %v485_v61 = vadd.f32 1.0, %v943_v60 }
 0x292   : > { %v487_v4 = vmul.f32 %v485_v61, %v479_v62 }
 0x293   : > { %v945_v63 = vpop.eup %944 }
 0x294   : > { %v486_v3 = vadd.f32 1.0, %v945_v63  ;;  %v489_v6 = vadd.f32 %v487_v4, %v320_v0 }
 0x296   : > { %v488_v5 = vmul.f32 %v486_v3, %v480_v2 }
 0x298   : > { %v490_v7 = vadd.f32 %v488_v5, %v321_v1 }
 0x29a   : > { %v491_v8 = vpack.c.bf16 %v490_v7, %v489_v6 }
 0x29c   : > { %843 = vmatmul.mubr.bf16.vlgmr.msra.gmra.mrb[0].mxu1 %v491_v8 }
 0x36f   : > { %v597_v9 = vpop.f32.mrb[0].mxu1 }
 0x370   : > { %v598_v11 = vadd.f32 %v771_v10, %v597_v9  ;;  %v844_v12 = vpop.f32.mrb[1].mxu1 }
 0x371   : > { %v600_v13 = vpop.f32.mrb[2].mxu1 }
 0x372   : > { %604 = vst [vmem:[%s302_s12] sm:$0xff] %v598_v11  ;;  %v601_v14 = vadd.f32 %v771_v10, %v600_v13  ;;  %v845_v15 = vpop.f32.mrb[3].mxu1 }
 0x374   : > { %605 = vst [vmem:[%s302_s12 + $0x8] sm:$0xff] %v601_v14 }
 0x375   : > { %1019 = shalt.err (!%p1016_p8)
}
 0x376   : > { %s1020_s7 = scalar_lea.hbm %s1335_s9, 256  ;;  %s1024_s25 = scalar_lea.hbm %s1388_s5, 512 }
 0x377   : > { %p1021_p4 = scmp.ne.s32.totalorder %s1335_s9, %s1020_s7  ;;  %p1025_p11 = scmp.lt.u32.totalorder %s1335_s9, %s1388_s5 }
 0x378   : > { %p1026_p9 = scmp.lt.u32.totalorder %s1024_s25, %s1020_s7  ;;  %p1028_p2 = scmp.lt.u32.totalorder %s1020_s7, %s1335_s9 }
 0x379   : > { %p1022_p7 = pnand %p1021_p4, %p1402_p10 }
 0x37a   : > { %p1027_p0 = por %p1026_p9, %p1025_p11 }
 0x37b   : > { %p1023_p12 = pneg %p1022_p7 }
 0x37c   : > { %p1029_p13 = por %p1028_p2, %p1027_p0 }
 0x37e   : > { %p1030_p1 = pnand %p1029_p13, %p1023_p12 }
 0x380   : > { %1033 = shalt.err (!%p1030_p1)
}
 0x381   : > { %s1101_s12 = smov 128   ;;  %s1102_s16 = smov 8  }
 0x382   : > { %850 = dma.vmem_to_hbm [thread:$0]  (%p1402_p10), %s1330_s13, 256, %s1335_s9, %s1337_s14, %s1101_s12, %s1101_s12, %s1102_s16  }
 0x383 PF: > { %p863_p3 = scmp.ge.s32.totalorder %s1092_s23, 2  ;;  %s637_s11 = sand.u32 1, %s1072_s18  }
 0x384   : > { %p1403_p5 = scmp.ne.s32.totalorder %s1396_s30, 0  ;;  %s638_s8 = scalar_lea.sflag [#allocation4], %s637_s11 }
 0x386   : > { %p860_p6 = pnand %p863_p3, %p1403_p5 }
 0x388   : > { %1067 = dma.done.wait (!%p860_p6), %s638_s8, 256  }
 0x389   : > { %1069 = vsyncadd (!%p860_p6), %s638_s8, 4294967040  ;;  %s20_s23 = sadd.s32 1, %s1092_s23   ;;  %s1404_s29 = sld [smem:[#allocation11_spill]] }
 0x38a   : > { %p17_p8 = scmp.ge.s32.totalorder %s20_s23, 4   ;;  %s1405_s18 = smov %s1076_s19 }
 0x38b   : > { %s1406_s19 = smov %s1080_s20  ;;  %s1407_s20 = smov %s1188_s6 }
 0x38c   : > { %s1408_s21 = smov %s1088_s22  ;;  %19 = sbr.rel (!%p17_p8) target bundleno = 6 (0x6), region = 92 }
 0x38f   : > { %s1409_s22 = smov %s1404_s29 }
 0x393   :  { %643 = vsyncpa [#allocation3], 1 }
 0x394   :  { %645 = vsyncpa [#allocation3 + $0x1], 1 }
 0x395   :  { %646 = vsyncpa [#allocation6], 1 }
 0x396   :  { %647 = vsyncpa [#allocation4], 1 }
 0x397   :  { %649 = vsyncpa [#allocation4 + $0x1], 1 }

// kernel: tpu_custom_call.1
= control target key start
LH: loop header
LB: loop body
LE: loop exit
PB: predicated region body
PF: predicated region fallthrough
CT: control target
= control target key end

     0   :  { %s1485_s0 = inlined_call_operand.vmem [shape: bf16[16,128], index: 0, kind: input, shape index: {}]   ;;  %s1486_s1 = inlined_call_operand.hbm [shape: bf16[2,128,128], index: 1, kind: input, shape index: {}]   ;;  %s1487_s2 = inlined_call_operand.vmem [shape: f32[2,3,128], index: 2, kind: input, shape index: {}]   ;;  %s1488_s3 = inlined_call_operand.hbm [shape: bf16[2,128,128], index: 3, kind: input, shape index: {}]   ;;  %s1489_s4 = inlined_call_operand.vmem [shape: f32[2,1,128], index: 4, kind: input, shape index: {}]   ;;  %s1490_s5 = inlined_call_operand.hbm [shape: f32[2,16,128], index: 5, kind: output, shape index: {}]  }
   0x1   :  { %1494 = sst [smem:[#allocation11_spill]] %s1486_s1 }
   0x2   :  { %10 = vsyncpa [#allocation3], 0 }
   0x3   :  { %12 = vsyncpa [#allocation3 + $0x1], 0 }
   0x4   :  { %13 = vsyncpa [#allocation6], 0 }
   0x5   :  { %15 = vsyncpa [#allocation6 + $0x1], 0 }
   0x6   :  { %16 = vsyncpa [#allocation4], 0 }
   0x7   :  { %18 = vsyncpa [#allocation4 + $0x1], 0  ;;  %s1185_s18 = smov 0   ;;  %s1187_s19 = smov 0  }
   0x8   :  { %s1189_s20 = smov 0   ;;  %s1191_s21 = smov 0  }
   0x9   :  { %s1193_s22 = smov 0   ;;  %s1195_s23 = smov 0  }
   0xa LB: > { %s799_s24 = sadd.s32 4294967295, %s1144_s23   ;;  %s800_s25 = sadd.s32 4294967294, %s1144_s23   ;;  %s1144_s23 = sphi %s1195_s23, %s24_s23   ;;  %s1140_s22 = sphi %s1193_s22, %s1512_s22   ;;  %s1136_s21 = sphi %s1191_s21, %s1511_s21   ;;  %s1132_s20 = sphi %s1189_s20, %s1510_s20   ;;  %s1128_s19 = sphi %s1187_s19, %s1509_s19   ;;  %s1124_s18 = sphi %s1185_s18, %s1508_s18  }
   0xb   : > { %s36_s26 = sadd.s32 1, %s1140_s22  ;;  %s69_s27 = sadd.s32 1, %s1132_s20 }
   0xc   : > { %p38_p0 = scmp.ge.s32.totalorder %s36_s26, 2  ;;  %p76_p1 = scmp.ne.s32.totalorder %s1132_s20, %s1128_s19 }
   0xd   : > { %p77_p2 = scmp.eq.s32.totalorder %s1144_s23, 0  ;;  %p82_p3 = scmp.ne.s32.totalorder %s1128_s19, %s1124_s18 }
   0xe   : > { %s1514_s26 = smov (%p38_p0, %s36_s26), 0  ;;  %p83_p5 = scmp.eq.s32.totalorder %s799_s24, 0 }
   0xf   : > { %p1226_p4 = por %p77_p2, %p76_p1  ;;  %s66_s29 = ssub.s32 %s1140_s22, %s1514_s26 }
  0x10   : > { %p186_p6 = scmp.eq.s32.totalorder %s799_s24, 1  ;;  %p67_p7 = scmp.eq.s32.totalorder %s66_s29, 0 }
  0x11   : > { %p1232_p8 = por %p83_p5, %p82_p3  ;;  %p192_p10 = scmp.eq.s32.totalorder %s800_s25, 1 }
  0x12   : > { %p1236_p9 = por %p186_p6, %p76_p1  ;;  %p916_p13 = scmp.lt.s32.totalorder %s1144_s23, 2 }
  0x13   : > { %s1496_s30 = scalar_select %p1232_p8, 1, 0 }
  0x14   : > { %s1497_s6 = scalar_select %p1236_p9, 1, 0 }
  0x15   : > { %s1241_s7 = scalar_select %p67_p7, %s1132_s20, %s69_s27  }
  0x16   : > { %p1243_p11 = por %p192_p10, %p82_p3  ;;  %s1250_s9 = sand.u32 1, %s1132_s20  }
  0x17   : > { %s804_s10 = sshll.u32 %s1250_s9, 6  ;;  %s838_s11 = sshll.u32 %s1140_s22, 10 }
  0x18   : > { %s1498_s8 = scalar_select %p1243_p11, 1, 0 }
  0x19   : > { %s1499_s1 = sld [smem:[#allocation11_spill]]  ;;  %s225_s15 = scalar_lea.vmem [#allocation2], %s804_s10 }
  0x1a   : > { %s232_s16 = sshll.u32 %s225_s15, 4  ;;  %p1267_p0 = pnand %p916_p13, %p1226_p4  ;;  %s1263_s16 = int_to_ptr.vmem [resolvable:$true] %s232_s16 }
  0x1b   : > { %s222_s24 = scalar_lea.sflag [#allocation3], %s1250_s9 }
  0x1c   : > { %p1000_p3 = pneg %p1267_p0 }
  0x1f   : > { %s1259_s14 = scalar_lea.hbm %s1499_s1, %s838_s11  ;;  %s1003_s28 = scalar_lea.hbm %s1499_s1, 2048 }
  0x20   : > { %s998_s25 = scalar_lea.hbm %s1259_s14, 1024  ;;  %p1004_p4 = scmp.lt.u32.totalorder %s1259_s14, %s1499_s1 }
  0x21   : > { %p999_p2 = scmp.ne.s32.totalorder %s1259_s14, %s998_s25  ;;  %p1005_p7 = scmp.lt.u32.totalorder %s1003_s28, %s998_s25 }
  0x22   : > { %p1007_p13 = scmp.lt.u32.totalorder %s998_s25, %s1259_s14 }
  0x23   : > { %p1001_p5 = pnand %p1000_p3, %p999_p2  ;;  %p1006_p10 = por %p1005_p7, %p1004_p4 }
  0x25   : > { %p1002_p6 = pneg %p1001_p5  ;;  %p1008_p12 = por %p1007_p13, %p1006_p10 }
  0x27   : > { %p1009_p1 = pnand %p1008_p12, %p1002_p6 }
  0x29   : > { %1012 = shalt.err (!%p1009_p1)
}
  0x2a   : > { %s1013_s15 = scalar_lea.vmem %s1263_s16, 1024  ;;  %s1146_s27 = smov [#allocation2]  }
  0x2b   : > { %p1014_p2 = scmp.ne.s32.totalorder %s1263_s16, %s1013_s15  ;;  %s1018_s29 = sshll.u32 %s1146_s27, 4  ;;  %s1019_s29 = int_to_ptr.vmem [resolvable:$false] %s1018_s29 }
  0x2c   : > { %s1020_s12 = scalar_lea.vmem %s1019_s29, 2048  ;;  %p1021_p9 = scmp.lt.s32.totalorder %s1263_s16, %s1019_s29 }
  0x2d   : > { %p1016_p5 = pnand %p1014_p2, %p1000_p3  ;;  %p1022_p4 = scmp.lt.s32.totalorder %s1020_s12, %s1013_s15 }
  0x2f   : > { %p1017_p11 = pneg %p1016_p5  ;;  %p1023_p7 = por %p1022_p4, %p1021_p9 }
  0x31   : > { %p1024_p10 = pnand %p1023_p7, %p1017_p11 }
  0x33   : > { %1027 = shalt.err (!%p1024_p10)
}
  0x34   : > { %s1492_s25 = smov 64   ;;  %s1148_s28 = smov 4  }
  0x35   : > { %908 = dma.hbm_to_vmem [thread:$0]  (!%p1267_p0), %s1259_s14, 1024, %s1263_s16, %s222_s24, %s1492_s25, %s1492_s25, %s1148_s28  }
  0x36   : > { %p274_p9 = scmp.lt.s32.totalorder %s1144_s23, 3  ;;  %s1309_s27 = scalar_lea.hbm %s1488_s3, %s838_s11 }
  0x37   : > { %p1501_p11 = scmp.ge.s32.totalorder %s1144_s23, 1  ;;  %s253_s12 = scalar_lea.vmem [#allocation5], %s804_s10 }
  0x38   : > { %s260_s1 = sshll.u32 %s253_s12, 4  ;;  %s250_s14 = scalar_lea.sflag [#allocation6], %s1250_s9  ;;  %s1319_s1 = int_to_ptr.vmem [resolvable:$true] %s260_s1 }
  0x39   : > { %p1313_p12 = pnand %p1501_p11, %p274_p9  ;;  %s1028_s16 = scalar_lea.hbm %s1309_s27, 1024 }
  0x3a   : > { %p1029_p1 = scmp.ne.s32.totalorder %s1309_s27, %s1028_s16  ;;  %s1033_s13 = scalar_lea.hbm %s1488_s3, 2048 }
  0x3b   : > { %p1034_p2 = scmp.lt.u32.totalorder %s1309_s27, %s1488_s3  ;;  %p1035_p5 = scmp.lt.u32.totalorder %s1033_s13, %s1028_s16 }
  0x3c   : > { %p1031_p6 = pnand %p1029_p1, %p1000_p3  ;;  %p1037_p7 = scmp.lt.u32.totalorder %s1028_s16, %s1309_s27 }
  0x3d   : > { %p1036_p4 = por %p1035_p5, %p1034_p2 }
  0x3e   : > { %p1032_p13 = pneg %p1031_p6 }
  0x3f   : > { %p1038_p10 = por %p1037_p7, %p1036_p4 }
  0x41   : > { %p1039_p9 = pnand %p1038_p10, %p1032_p13 }
  0x43   : > { %1042 = shalt.err (!%p1039_p9)
}
  0x44   : > { %s1043_s10 = scalar_lea.vmem %s1319_s1, 1024  ;;  %s1149_s12 = smov [#allocation5]  }
  0x45   : > { %p1044_p11 = scmp.ne.s32.totalorder %s1319_s1, %s1043_s10  ;;  %s1048_s11 = sshll.u32 %s1149_s12, 4  ;;  %s1049_s11 = int_to_ptr.vmem [resolvable:$false] %s1048_s11 }
  0x46   : > { %s1050_s25 = scalar_lea.vmem %s1049_s11, 2048  ;;  %p1051_p8 = scmp.lt.s32.totalorder %s1319_s1, %s1049_s11 }
  0x47   : > { %p1046_p1 = pnand %p1044_p11, %p1000_p3  ;;  %p1052_p2 = scmp.lt.s32.totalorder %s1050_s25, %s1043_s10 }
  0x49   : > { %p1047_p6 = pneg %p1046_p1  ;;  %p1053_p5 = por %p1052_p2, %p1051_p8 }
  0x4b   : > { %p1054_p4 = pnand %p1053_p5, %p1047_p6 }
  0x4d   : > { %1057 = shalt.err (!%p1054_p4)
}
  0x4e   : > { %s1503_s16 = smov 64   ;;  %278 = sbr.rel (%p1313_p12) target bundleno = 904 (0x388), region = 40 }
  0x4f   : > { %911 = dma.hbm_to_vmem [thread:$0]  (!%p1267_p0), %s1309_s27, 1024, %s1319_s1, %s250_s14, %s1503_s16, %s1503_s16, %s1148_s28  }
  0x50   : > { %s1353_s24 = sand.u32 (!%p1313_p12), 1, %s1128_s19   ;;  %p1504_p8 = scmp.ne.s32.totalorder (!%p1313_p12), %s1496_s30, 0 }
  0x51   : > { %s811_s13 = sshll.u32 (!%p1313_p12), %s1353_s24, 6  ;;  %s281_s15 = scalar_lea.sflag (!%p1313_p12), [#allocation3], %s1353_s24 }
  0x52   : > { %s1357_s17 = scalar_lea.vmem (!%p1313_p12), [#allocation2], %s811_s13 }
  0x55   : > { %1111 = dma.done.wait (%p1504_p8), %s281_s15, 1024  }
  0x56   : > { %1113 = vsyncadd (%p1504_p8), %s281_s15, 4294966272  ;;  %s290_s1 = scalar_lea.sflag [#allocation6], %s1353_s24  ;;  %s1364_s9 = scalar_lea.vmem [#allocation5], %s811_s13 }
  0x57   : > { %1115 = dma.done.wait (%p1504_p8), %s290_s1, 1024  }
  0x58   : > { %1117 = vsyncadd (%p1504_p8), %s290_s1, 4294966272  ;;  %v1150_v0 = vmov 0.0   ;;  %vm1151_vm0 = vmmov 0   ;;  %v972_v1 = vld [vmem:[%s1357_s17] sm:$0xff]   ;;  %v973_v2 = vld [vmem:[%s1357_s17 + $0x8] sm:$0xff]   ;;  %p343_p0 = scmp.lt.s32.totalorder %s1136_s21, 1  ;;  %v373_v10 = vlaneseq }
  0x59   : > { %859 = vmatprep.subr.bf16.mxu0 %v1150_v0  ;;  %875 = vmatprep.mubr.msk.bf16.mxu0 %vm1151_vm0, %v1150_v0  ;;  %v974_v3 = vld [vmem:[%s1357_s17 + $0x10] sm:$0xff]   ;;  %v975_v4 = vld [vmem:[%s1357_s17 + $0x18] sm:$0xff]   ;;  %v976_v5 = vld [vmem:[%s1357_s17 + $0x20] sm:$0xff]   ;;  %s813_s11 = sshll.u32 %s1353_s24, 4  ;;  %s840_s1 = sshll.u32 %s1136_s21, 8 }
  0x5a   : > { %879 = vmatprep.subr.bf16.mxu1 %v1150_v0  ;;  %895 = vmatprep.mubr.msk.bf16.mxu1 %vm1151_vm0, %v1150_v0  ;;  %v977_v6 = vld [vmem:[%s1357_s17 + $0x28] sm:$0xff]   ;;  %v978_v7 = vld [vmem:[%s1357_s17 + $0x30] sm:$0xff]   ;;  %v979_v8 = vld [vmem:[%s1357_s17 + $0x38] sm:$0xff]   ;;  %s1397_s27 = scalar_select %p343_p0, %s1136_s21, 1  ;;  %v1400_v11 = vshrl.u32 %v373_v10, 7  ;;  %v481_v21 = vand.u32 127, %v373_v10 }
  0x5b   : > { %860 = vmatpush3.bf16.msra.mxu0 %v972_v1  ;;  %v1391_v9 = vld [vmem:[%s1485_s0] sm:$0xff]   ;;  %v982_v33 = vld [vmem:[%s1364_s9 + $0x8] sm:$0xff]   ;;  %v983_v34 = vld [vmem:[%s1364_s9 + $0x10] sm:$0xff]   ;;  %s336_s15 = scalar_lea.vmem [#allocation7], %s813_s11  ;;  %s1436_s28 = scalar_lea.hbm %s1490_s5, %s840_s1 }
  0x5c   : > { %861 = vmatprep.subr.bf16.mxu0 %v1150_v0  ;;  %s814_s29 = sshll.u32 %s1397_s27, 2  ;;  %v375_v12 = vsub.s32 0, %v1400_v11  ;;  %vm482_vm1 = vcmp.lt.s32.totalorder %v481_v21, 32  ;;  %v981_v32 = vld [vmem:[%s1364_s9] sm:$0xff]   ;;  %v984_v35 = vld [vmem:[%s1364_s9 + $0x18] sm:$0xff]   ;;  %v986_v37 = vld [vmem:[%s1364_s9 + $0x28] sm:$0xff]   ;;  %v355_v1 = vunpack.c.h.bf16 %v1391_v9  ;;  %s349_s13 = scalar_lea.vmem %s1489_s4, %s1397_s27 }
  0x5d   : > { %s346_s12 = scalar_lea.vmem %s1487_s2, %s814_s29  ;;  %880 = vmatpush3.bf16.msra.mxu1 %v981_v32  ;;  %v985_v36 = vld [vmem:[%s1364_s9 + $0x20] sm:$0xff]   ;;  %v987_v38 = vld [vmem:[%s1364_s9 + $0x30] sm:$0xff]   ;;  %v988_v39 = vld [vmem:[%s1364_s9 + $0x38] sm:$0xff]   ;;  %v503_v46 = vsub.s32 1, %v1400_v11  ;;  %v509_v47 = vsub.s32 2, %v1400_v11  ;;  %s656_s17 = sshll.u32 %s336_s15, 4  ;;  %s1431_s17 = int_to_ptr.vmem [resolvable:$true] %s656_s17 }
  0x5e   : > { %v356_v13 = vld [vmem:[%s346_s12] sm:$0x7]  ;;  %881 = vmatprep.subr.bf16.mxu1 %v1150_v0  ;;  %s641_s27 = scalar_lea.sflag [#allocation4], %s1353_s24  ;;  %s1058_s21 = scalar_lea.vmem %s1431_s17, 256 }
  0x5f   : > { %862 = vmatpush3.bf16.msra.mxu0 %v973_v2  ;;  %v376_v14 = vrot.slane %v356_v13, %v375_v12  ;;  %v504_v48 = vrot.slane %v356_v13, %v503_v46  ;;  %v510_v50 = vrot.slane %v356_v13, %v509_v47  ;;  %v824_v10 = vld [vmem:[%s349_s13] ss:$0 sm:$0xff]  ;;  %p1059_p3 = scmp.ne.s32.totalorder %s1431_s17, %s1058_s21  ;;  %p1505_p12 = scmp.ne.s32.totalorder %s1497_s6, 0 }
  0x60   : > { %863 = vmatprep.subr.bf16.mxu0 %v1150_v0  ;;  %s1152_s29 = smov [#allocation7]  }
  0x61   : > { %882 = vmatpush3.bf16.msra.mxu1 %v982_v33  ;;  %p1060_p13 = pnand %p1059_p3, %p1505_p12  ;;  %s1062_s14 = sshll.u32 %s1152_s29, 4  ;;  %s1063_s14 = int_to_ptr.vmem [resolvable:$false] %s1062_s14 }
  0x62   : > { %883 = vmatprep.subr.bf16.mxu1 %v1150_v0  ;;  %s1064_s10 = scalar_lea.vmem %s1063_s14, 512  ;;  %p1065_p10 = scmp.lt.s32.totalorder %s1431_s17, %s1063_s14 }
  0x63   : > { %864 = vmatpush3.bf16.msra.mxu0 %v974_v3  ;;  %p1061_p7 = pneg %p1060_p13  ;;  %p1066_p9 = scmp.lt.s32.totalorder %s1064_s10, %s1058_s21 }
  0x64   : > { %865 = vmatprep.subr.bf16.mxu0 %v1150_v0 }
  0x65   : > { %884 = vmatpush3.bf16.msra.mxu1 %v983_v34  ;;  %p1067_p11 = por %p1066_p9, %p1065_p10 }
  0x66   : > { %885 = vmatprep.subr.bf16.mxu1 %v1150_v0 }
  0x67   : > { %866 = vmatpush3.bf16.msra.mxu0 %v975_v4  ;;  %p1068_p1 = pnand %p1067_p11, %p1061_p7 }
  0x68   : > { %867 = vmatprep.subr.bf16.mxu0 %v1150_v0 }
  0x69   : > { %886 = vmatpush3.bf16.msra.mxu1 %v984_v35 }
  0x6a   : > { %887 = vmatprep.subr.bf16.mxu1 %v1150_v0 }
  0x6b   : > { %868 = vmatpush3.bf16.msra.mxu0 %v976_v5 }
  0x6c   : > { %869 = vmatprep.subr.bf16.mxu0 %v1150_v0 }
  0x6d   : > { %888 = vmatpush3.bf16.msra.mxu1 %v985_v36 }
  0x6e   : > { %889 = vmatprep.subr.bf16.mxu1 %v1150_v0 }
  0x6f   : > { %870 = vmatpush3.bf16.msra.mxu0 %v977_v6 }
  0x70   : > { %871 = vmatprep.subr.bf16.mxu0 %v1150_v0 }
  0x71   : > { %890 = vmatpush3.bf16.msra.mxu1 %v986_v37 }
  0x72   : > { %891 = vmatprep.subr.bf16.mxu1 %v1150_v0 }
  0x73   : > { %872 = vmatpush3.bf16.msra.mxu0 %v978_v7 }
  0x74   : > { %873 = vmatprep.subr.bf16.mxu0 %v1150_v0 }
  0x75   : > { %892 = vmatpush3.bf16.msra.mxu1 %v987_v38 }
  0x76   : > { %893 = vmatprep.subr.bf16.mxu1 %v1150_v0  ;;  %v354_v0 = vunpack.c.l.bf16 %v1391_v9 }
  0x77   : > { %874 = vmatpush3.bf16.msra.mxu0 %v979_v8 }
  0x79   : > { %894 = vmatpush3.bf16.msra.mxu1 %v988_v39 }
  0x7a   : > { %876 = vmatmul.mubr.bf16.vlgmr.msra.gmra.mrb[0].mxu0 %v1391_v9 }
 0x14d   : > { %v465_v15 = vpop.f32.mrb[0].mxu0 }
 0x14e   : > { %v466_v16 = vadd.f32 %v465_v15, %v376_v14  ;;  %v877_v17 = vpop.f32.mrb[1].mxu0 }
 0x14f   : > { %v468_v18 = vpop.f32.mrb[2].mxu0 }
 0x150   : > { %472 = vadd.xlane.f32.xlu0 %v466_v16  ;;  %v878_v19 = vpop.f32.mrb[3].mxu0  ;;  %v469_v20 = vadd.f32 %v468_v18, %v376_v14 }
 0x154   : > { %474 = vadd.xlane.f32.xlu0 %v469_v20 }
 0x1dd   : > { %v473_v22 = vpop.xlane.xlu0 %472 }
 0x1de   : > { %v476_v23 = vmul.f32 0.03125, %v473_v22 }
 0x1e0   : > { %v478_v24 = vsub.f32 %v466_v16, %v476_v23 }
 0x1e1   : > { %v475_v25 = vpop.xlane.xlu0 %474 }
 0x1e2   : > { %v477_v26 = vmul.f32 0.03125, %v475_v25  ;;  %v485_v27 = vsel %vm482_vm1, %v478_v24, 0.0 }
 0x1e3   : > { %v487_v28 = vmul.f32 %v485_v27, %v485_v27 }
 0x1e4   : > { %v479_v29 = vsub.f32 %v469_v20, %v477_v26 }
 0x1e5   : > { %489 = vadd.xlane.f32.xlu1 %v487_v28 }
 0x1e6   : > { %v486_v30 = vsel %vm482_vm1, %v479_v29, 0.0 }
 0x1e7   : > { %v488_v31 = vmul.f32 %v486_v30, %v486_v30 }
 0x1e9   : > { %491 = vadd.xlane.f32.xlu1 %v488_v31 }
 0x272   : > { %v490_v40 = vpop.xlane.xlu1 %489 }
 0x273   : > { %v493_v41 = vmul.f32 0.03125, %v490_v40 }
 0x275   : > { %v495_v42 = vadd.f32 1e-05, %v493_v41 }
 0x276   : > { %v492_v43 = vpop.xlane.xlu1 %491 }
 0x277   : > { %990 = vrsqrt.f32 %v495_v42  ;;  %v494_v44 = vmul.f32 0.03125, %v492_v43 }
 0x279   : > { %v496_v45 = vadd.f32 1e-05, %v494_v44 }
 0x27b   : > { %992 = vrsqrt.f32 %v496_v45 }
 0x281   : > { %v991_v49 = vpop.eup %990 }
 0x282   : > { %v499_v51 = vmul.f32 %v991_v49, %v485_v27 }
 0x284   : > { %v505_v52 = vmul.f32 %v504_v48, %v499_v51 }
 0x285   : > { %v993_v53 = vpop.eup %992 }
 0x286   : > { %v500_v54 = vmul.f32 %v993_v53, %v486_v30  ;;  %v511_v55 = vadd.f32 %v510_v50, %v505_v52 }
 0x288   : > { %v506_v56 = vmul.f32 %v504_v48, %v500_v54  ;;  %v515_v57 = vmul.f32 0.70710677, %v511_v55  ;;  %v513_v62 = vmul.f32 0.5, %v511_v55 }
 0x28a   : > { %v512_v58 = vadd.f32 %v510_v50, %v506_v56  ;;  %994 = verf.f32 %v515_v57 }
 0x28c   : > { %v516_v59 = vmul.f32 0.70710677, %v512_v58  ;;  %v514_v2 = vmul.f32 0.5, %v512_v58 }
 0x28e   : > { %996 = verf.f32 %v516_v59 }
 0x294   : > { %v995_v60 = vpop.eup %994 }
 0x295   : > { %v519_v61 = vadd.f32 1.0, %v995_v60 }
 0x297   : > { %v521_v4 = vmul.f32 %v519_v61, %v513_v62 }
 0x298   : > { %v997_v63 = vpop.eup %996 }
 0x299   : > { %v520_v3 = vadd.f32 1.0, %v997_v63  ;;  %v523_v6 = vadd.f32 %v521_v4, %v354_v0 }
 0x29b   : > { %v522_v5 = vmul.f32 %v520_v3, %v514_v2 }
 0x29d   : > { %v524_v7 = vadd.f32 %v522_v5, %v355_v1 }
 0x29f   : > { %v525_v8 = vpack.c.bf16 %v524_v7, %v523_v6 }
 0x2a1   : > { %896 = vmatmul.mubr.bf16.vlgmr.msra.gmra.mrb[0].mxu1 %v525_v8 }
 0x374   : > { %v631_v9 = vpop.f32.mrb[0].mxu1 }
 0x375   : > { %v632_v11 = vadd.f32 %v824_v10, %v631_v9  ;;  %v897_v12 = vpop.f32.mrb[1].mxu1 }
 0x376   : > { %v634_v13 = vpop.f32.mrb[2].mxu1 }
 0x377   : > { %638 = vst [vmem:[%s336_s15] sm:$0xff] %v632_v11  ;;  %v635_v14 = vadd.f32 %v824_v10, %v634_v13  ;;  %v898_v15 = vpop.f32.mrb[3].mxu1 }
 0x379   : > { %639 = vst [vmem:[%s336_s15 + $0x8] sm:$0xff] %v635_v14 }
 0x37a   : > { %1071 = shalt.err (!%p1068_p1)
}
 0x37b   : > { %s1072_s12 = scalar_lea.hbm %s1436_s28, 256  ;;  %s1076_s16 = scalar_lea.hbm %s1490_s5, 512 }
 0x37c   : > { %p1073_p6 = scmp.ne.s32.totalorder %s1436_s28, %s1072_s12  ;;  %p1077_p4 = scmp.lt.u32.totalorder %s1436_s28, %s1490_s5 }
 0x37d   : > { %p1078_p8 = scmp.lt.u32.totalorder %s1076_s16, %s1072_s12  ;;  %p1080_p3 = scmp.lt.u32.totalorder %s1072_s12, %s1436_s28 }
 0x37e   : > { %p1074_p2 = pnand %p1073_p6, %p1505_p12 }
 0x37f   : > { %p1079_p0 = por %p1078_p8, %p1077_p4 }
 0x380   : > { %p1075_p5 = pneg %p1074_p2 }
 0x381   : > { %p1081_p13 = por %p1080_p3, %p1079_p0 }
 0x383   : > { %p1082_p7 = pnand %p1081_p13, %p1075_p5 }
 0x385   : > { %1085 = shalt.err (!%p1082_p7)
}
 0x386   : > { %s1153_s1 = smov 128   ;;  %s1154_s9 = smov 8  }
 0x387   : > { %903 = dma.vmem_to_hbm [thread:$0]  (%p1505_p12), %s1431_s17, 256, %s1436_s28, %s641_s27, %s1153_s1, %s1153_s1, %s1154_s9  }
 0x388 PF: > { %s671_s30 = sand.u32 1, %s1124_s18   ;;  %p1506_p10 = scmp.ne.s32.totalorder %s1498_s8, 0 }
 0x389   : > { %p1507_p9 = scmp.ge.s32.totalorder %s1144_s23, 2  ;;  %s672_s21 = scalar_lea.sflag [#allocation4], %s671_s30 }
 0x38b   : > { %p913_p11 = pnand %p1507_p9, %p1506_p10 }
 0x38d   : > { %1119 = dma.done.wait (!%p913_p11), %s672_s21, 256  }
 0x38e   : > { %1121 = vsyncadd (!%p913_p11), %s672_s21, 4294967040  ;;  %s24_s23 = sadd.s32 1, %s1144_s23   ;;  %s1508_s18 = smov %s1128_s19 }
 0x38f   : > { %p21_p1 = scmp.ge.s32.totalorder %s24_s23, 4   ;;  %s1509_s19 = smov %s1132_s20 }
 0x390   : > { %s1510_s20 = smov %s1241_s7  ;;  %s1511_s21 = smov %s1140_s22 }
 0x391   : > { %s1512_s22 = smov %s1514_s26  ;;  %23 = sbr.rel (!%p21_p1) target bundleno = 10 (0xa), region = 107 }
 0x398   :  { %677 = vsyncpa [#allocation3], 1 }
 0x399   :  { %679 = vsyncpa [#allocation3 + $0x1], 1 }
 0x39a   :  { %680 = vsyncpa [#allocation6], 1 }
 0x39b   :  { %682 = vsyncpa [#allocation6 + $0x1], 1 }
 0x39c   :  { %683 = vsyncpa [#allocation4], 1 }
 0x39d   :  { %685 = vsyncpa [#allocation4 + $0x1], 1 }

</bundles_post_ra>
